<compile_context>
chip_gen: v6e
topology: v6e:2x2x1
jax: 0.10.0
libtpu: 0.0.40
codegen_flags: <defaults>
</compile_context>

<pallas_src>
import functools

import jax
import jax.numpy as jnp
from jax.experimental import pallas as pl
from jax.experimental.pallas import tpu as pltpu


def _apply_act(y, activation):
    if activation == "relu":
        return jnp.maximum(y, 0.0)
    if activation == "tanh":
        return jnp.tanh(y)
    if activation == "leakyrelu":
        return jnp.where(y >= 0.0, y, 0.01 * y)
    if activation == "sigmoid":
        return jax.nn.sigmoid(y)
    if activation is None:
        return y
    raise NotImplementedError(activation)


def _fused_mlp_kernel(*refs, n_layers, hidden_act, out_act):
    """One batch-tile of the whole MLP: chained bf16 matmuls (f32 accumulation)
    + f32 bias/activation; intermediates stay as VMEM/vreg values, only the
    final result is stored."""
    x_ref = refs[0]
    o_ref = refs[-1]
    wb = refs[1:-1]  # (w1, b1, w2, b2, ..., wn, bn)

    h = x_ref[...]
    for i in range(n_layers):
        w = wb[2 * i][...]          # bf16 (din, dout) - MXU-native operand
        b = wb[2 * i + 1][...]      # f32 (1, dout) -> broadcasts over rows
        y = jnp.dot(h.astype(w.dtype), w,
                    preferred_element_type=jnp.float32) + b
        act = hidden_act if i < n_layers - 1 else out_act
        h = _apply_act(y, act)      # f32 epilogue (portable on v5e)
    o_ref[...] = h.astype(o_ref.dtype)


def _round_up(v, m):
    return ((v + m - 1) // m) * m


def _choose_block_b(B, block_b):
    """Pick the batch tile: large enough to amortize per-step overhead, but
    guarantee >=2 grid steps for megacore when B is big enough to split."""
    if B <= 16:
        return B
    half = _round_up(pl.cdiv(B, 2), 8)   # ensure grid length >= 2
    bb = min(block_b, half)
    return max(8, bb)


def fused_mlp(x, params, hidden_act="relu", out_act=None, block_b=4096):
    """x: (B, Din); params: list of (w (din, dout) bf16, b (dout,) f32).

    Single fused pallas_call.  Grid runs over the batch dimension only; weights
    and biases are full-extent constant-index blocks (loaded once)."""
    B, Din = x.shape
    n_layers = len(params)
    Dout = params[-1][0].shape[1]

    bb = _choose_block_b(B, block_b)

    in_specs = [pl.BlockSpec((bb, Din), lambda i: (i, 0))]
    args = [x]
    flops = 0
    transcendentals = 0
    bytes_accessed = x.size * x.dtype.itemsize
    for li, (w, b) in enumerate(params):
        din, dout = w.shape
        b2 = b.reshape(1, dout).astype(jnp.float32)
        in_specs.append(pl.BlockSpec((din, dout), lambda i: (0, 0)))
        in_specs.append(pl.BlockSpec((1, dout), lambda i: (0, 0)))
        args.extend([w, b2])
        flops += 2 * B * din * dout
        act = hidden_act if li < n_layers - 1 else out_act
        if act in ("sigmoid", "tanh"):
            transcendentals += B * dout
        bytes_accessed += w.size * w.dtype.itemsize + b2.size * b2.dtype.itemsize
    bytes_accessed += B * Dout * x.dtype.itemsize

    # VMEM budget for the chosen tile: every (bb, <=128) f32 block is padded to
    # 128 lanes, so budget ~ double-buffered x + out + chained intermediates.
    lane = 128
    per_row = (2 * lane * x.dtype.itemsize       # x (double-buffered)
               + 2 * lane * 4                    # out (double-buffered, f32)
               + (n_layers + 1) * lane * 4)      # chained f32 intermediates
    vmem_bytes = int(min(100 << 20, max(32 << 20, 2 * bb * per_row + (1 << 20))))

    kernel = functools.partial(
        _fused_mlp_kernel,
        n_layers=n_layers,
        hidden_act=hidden_act,
        out_act=out_act,
    )

    return pl.pallas_call(
        kernel,
        out_shape=jax.ShapeDtypeStruct((B, Dout), x.dtype),
        grid=(pl.cdiv(B, bb),),
        in_specs=in_specs,
        out_specs=pl.BlockSpec((bb, Dout), lambda i: (i, 0)),
        compiler_params=pltpu.CompilerParams(
            dimension_semantics=("parallel",),
            vmem_limit_bytes=vmem_bytes,
        ),
        cost_estimate=pl.CostEstimate(
            flops=flops,
            transcendentals=transcendentals,
            bytes_accessed=bytes_accessed,
        ),
    )(*args)


class FullyConnectedLayerPallas:
    """JAX/Pallas port of the PyTorch FullyConnectedLayer forward pass
    (batch_norm=False, dropout=None): a single fused Pallas kernel.
    Weights are kept in bf16 (MXU-native); biases and all epilogue math in f32."""

    def __init__(self, input_size, hidden_unit, activation="relu",
                 sigmoid=False, key=None, w_dtype=jnp.bfloat16):
        assert len(hidden_unit) >= 1
        self.sigmoid = sigmoid
        self.activation = activation.lower()
        if key is None:
            key = jax.random.PRNGKey(0)
        dims = [input_size] + list(hidden_unit)
        self.params = []
        for i in range(len(hidden_unit)):
            fan_in, fan_out = dims[i], dims[i + 1]
            key, kw, kb = jax.random.split(key, 3)
            bound = 1.0 / (fan_in ** 0.5)  # PyTorch nn.Linear default init range
            w = jax.random.uniform(kw, (fan_in, fan_out), jnp.float32, -bound, bound)
            b = jax.random.uniform(kb, (fan_out,), jnp.float32, -bound, bound)
            self.params.append((w.astype(w_dtype), b))

    def __call__(self, x):
        out_act = "sigmoid" if self.sigmoid else None
        return fused_mlp(x, self.params,
                         hidden_act=self.activation, out_act=out_act)


if __name__ == "__main__":
    key = jax.random.PRNGKey(0)
    k_in, k_params = jax.random.split(key)

    batch = 8
    input_size = 32
    hidden_unit = [64, 32, 8]

    x = jax.random.normal(k_in, (batch, input_size), dtype=jnp.float32)

    model = FullyConnectedLayerPallas(
        input_size, hidden_unit, activation="relu", sigmoid=True, key=k_params
    )

    out = model(x)
    out = jax.block_until_ready(out)

    # Pure-JAX reference mirroring the kernel's numerics
    # (bf16 matmul operands, f32 accumulation, f32 bias/activation).
    ref = x
    for i, (w, b) in enumerate(model.params):
        ref = jnp.dot(ref.astype(jnp.bfloat16), w,
                      preferred_element_type=jnp.float32) + b
        if i < len(model.params) - 1:
            ref = jnp.maximum(ref, 0.0)
    ref = jax.nn.sigmoid(ref)  # sigmoid=True in this config

    assert out.shape == (batch, hidden_unit[-1])
    assert jnp.allclose(out, ref, atol=1e-3, rtol=1e-3)

    print("KERNEL_OK")
</pallas_src>

<mosaic_0001>
module attributes {stable_mosaic.version = 11 : i64} {
  func.func @_fused_mlp_kernel(%arg0: i32, %arg1: memref<8x32xf32, #tpu.memory_space<vmem>>, %arg2: memref<32x64xbf16, #tpu.memory_space<vmem>>, %arg3: memref<1x64xf32, #tpu.memory_space<vmem>>, %arg4: memref<64x32xbf16, #tpu.memory_space<vmem>>, %arg5: memref<1x32xf32, #tpu.memory_space<vmem>>, %arg6: memref<32x8xbf16, #tpu.memory_space<vmem>>, %arg7: memref<1x8xf32, #tpu.memory_space<vmem>>, %arg8: memref<8x8xf32, #tpu.memory_space<vmem>>) attributes {dimension_semantics = [#tpu.dimension_semantics<parallel>], iteration_bounds = array<i64: 1>, scalar_prefetch = 0 : i64, scratch_operands = 0 : i64, tpu.core_type = #tpu.core_type<tc>, window_params = [{transform_indices = @transform_0, window_bounds = array<i64: 8, 32>}, {pipeline_mode = #tpu.pipeline_mode<synchronous>, transform_indices = @transform_1, window_bounds = array<i64: 32, 64>}, {pipeline_mode = #tpu.pipeline_mode<synchronous>, transform_indices = @transform_2, window_bounds = array<i64: 1, 64>}, {pipeline_mode = #tpu.pipeline_mode<synchronous>, transform_indices = @transform_3, window_bounds = array<i64: 64, 32>}, {pipeline_mode = #tpu.pipeline_mode<synchronous>, transform_indices = @transform_4, window_bounds = array<i64: 1, 32>}, {pipeline_mode = #tpu.pipeline_mode<synchronous>, transform_indices = @transform_5, window_bounds = array<i64: 32, 8>}, {pipeline_mode = #tpu.pipeline_mode<synchronous>, transform_indices = @transform_6, window_bounds = array<i64: 1, 8>}, {transform_indices = @transform_7, window_bounds = array<i64: 8, 8>}]} {
    %c0 = arith.constant 0 : index
    %c0_0 = arith.constant 0 : index
    %0 = vector.load %arg1[%c0, %c0_0] : memref<8x32xf32, #tpu.memory_space<vmem>>, vector<8x32xf32>
    %c0_1 = arith.constant 0 : index
    %c0_2 = arith.constant 0 : index
    %1 = vector.load %arg2[%c0_1, %c0_2] : memref<32x64xbf16, #tpu.memory_space<vmem>>, vector<32x64xbf16>
    %c0_3 = arith.constant 0 : index
    %c0_4 = arith.constant 0 : index
    %2 = vector.load %arg3[%c0_3, %c0_4] : memref<1x64xf32, #tpu.memory_space<vmem>>, vector<1x64xf32>
    %3 = arith.truncf %0 : vector<8x32xf32> to vector<8x32xbf16>
    %cst = arith.constant dense<0.000000e+00> : vector<8x64xf32>
    %4 = tpu.matmul %3, %1, %cst {dimension_numbers = #tpu.dot_dimension_numbers<[1], [0], [0], [1], [0, 0, 1, 1], [], []>} : vector<8x32xbf16>, vector<32x64xbf16>, vector<8x64xf32> -> vector<8x64xf32>
    %5 = vector.broadcast %2 : vector<1x64xf32> to vector<8x64xf32>
    %6 = arith.addf %4, %5 : vector<8x64xf32>
    %cst_5 = arith.constant 0.000000e+00 : f32
    %7 = vector.broadcast %cst_5 : f32 to vector<8x64xf32>
    %8 = arith.maximumf %6, %7 : vector<8x64xf32>
    %c0_6 = arith.constant 0 : index
    %c0_7 = arith.constant 0 : index
    %9 = vector.load %arg4[%c0_6, %c0_7] : memref<64x32xbf16, #tpu.memory_space<vmem>>, vector<64x32xbf16>
    %c0_8 = arith.constant 0 : index
    %c0_9 = arith.constant 0 : index
    %10 = vector.load %arg5[%c0_8, %c0_9] : memref<1x32xf32, #tpu.memory_space<vmem>>, vector<1x32xf32>
    %11 = arith.truncf %8 : vector<8x64xf32> to vector<8x64xbf16>
    %cst_10 = arith.constant dense<0.000000e+00> : vector<8x32xf32>
    %12 = tpu.matmul %11, %9, %cst_10 {dimension_numbers = #tpu.dot_dimension_numbers<[1], [0], [0], [1], [0, 0, 1, 1], [], []>} : vector<8x64xbf16>, vector<64x32xbf16>, vector<8x32xf32> -> vector<8x32xf32>
    %13 = vector.broadcast %10 : vector<1x32xf32> to vector<8x32xf32>
    %14 = arith.addf %12, %13 : vector<8x32xf32>
    %cst_11 = arith.constant 0.000000e+00 : f32
    %15 = vector.broadcast %cst_11 : f32 to vector<8x32xf32>
    %16 = arith.maximumf %14, %15 : vector<8x32xf32>
    %c0_12 = arith.constant 0 : index
    %c0_13 = arith.constant 0 : index
    %17 = vector.load %arg6[%c0_12, %c0_13] : memref<32x8xbf16, #tpu.memory_space<vmem>>, vector<32x8xbf16>
    %c0_14 = arith.constant 0 : index
    %c0_15 = arith.constant 0 : index
    %18 = vector.load %arg7[%c0_14, %c0_15] : memref<1x8xf32, #tpu.memory_space<vmem>>, vector<1x8xf32>
    %19 = arith.truncf %16 : vector<8x32xf32> to vector<8x32xbf16>
    %cst_16 = arith.constant dense<0.000000e+00> : vector<8x8xf32>
    %20 = tpu.matmul %19, %17, %cst_16 {dimension_numbers = #tpu.dot_dimension_numbers<[1], [0], [0], [1], [0, 0, 1, 1], [], []>} : vector<8x32xbf16>, vector<32x8xbf16>, vector<8x8xf32> -> vector<8x8xf32>
    %21 = vector.broadcast %18 : vector<1x8xf32> to vector<8x8xf32>
    %22 = arith.addf %20, %21 : vector<8x8xf32>
    %23 = arith.negf %22 : vector<8x8xf32>
    %24 = math.exp %23 : vector<8x8xf32>
    %cst_17 = arith.constant 1.000000e+00 : f32
    %25 = vector.broadcast %cst_17 : f32 to vector<8x8xf32>
    %26 = arith.addf %25, %24 : vector<8x8xf32>
    %27 = arith.divf %25, %26 : vector<8x8xf32>
    %c0_18 = arith.constant 0 : index
    %c0_19 = arith.constant 0 : index
    %28 = vector.load %arg8[%c0_18, %c0_19] : memref<8x8xf32, #tpu.memory_space<vmem>>, vector<8x8xf32>
    tpu.vector_store %arg8[%c0_18, %c0_19], %27 {strides = array<i32>} : memref<8x8xf32, #tpu.memory_space<vmem>>, vector<8x8xf32>,
    return
  }
  func.func @transform_0(%arg0: i32) -> (i32, i32) {
    %c0_i32 = arith.constant 0 : i32
    %c0_i32_0 = arith.constant 0 : i32
    return %arg0, %c0_i32 : i32, i32
  }
  func.func @transform_1(%arg0: i32) -> (i32, i32) {
    %c0_i32 = arith.constant 0 : i32
    %c0_i32_0 = arith.constant 0 : i32
    %c0_i32_1 = arith.constant 0 : i32
    return %c0_i32, %c0_i32_0 : i32, i32
  }
  func.func @transform_2(%arg0: i32) -> (i32, i32) {
    %c0_i32 = arith.constant 0 : i32
    %c0_i32_0 = arith.constant 0 : i32
    %c0_i32_1 = arith.constant 0 : i32
    return %c0_i32, %c0_i32_0 : i32, i32
  }
  func.func @transform_3(%arg0: i32) -> (i32, i32) {
    %c0_i32 = arith.constant 0 : i32
    %c0_i32_0 = arith.constant 0 : i32
    %c0_i32_1 = arith.constant 0 : i32
    return %c0_i32, %c0_i32_0 : i32, i32
  }
  func.func @transform_4(%arg0: i32) -> (i32, i32) {
    %c0_i32 = arith.constant 0 : i32
    %c0_i32_0 = arith.constant 0 : i32
    %c0_i32_1 = arith.constant 0 : i32
    return %c0_i32, %c0_i32_0 : i32, i32
  }
  func.func @transform_5(%arg0: i32) -> (i32, i32) {
    %c0_i32 = arith.constant 0 : i32
    %c0_i32_0 = arith.constant 0 : i32
    %c0_i32_1 = arith.constant 0 : i32
    return %c0_i32, %c0_i32_0 : i32, i32
  }
  func.func @transform_6(%arg0: i32) -> (i32, i32) {
    %c0_i32 = arith.constant 0 : i32
    %c0_i32_0 = arith.constant 0 : i32
    %c0_i32_1 = arith.constant 0 : i32
    return %c0_i32, %c0_i32_0 : i32, i32
  }
  func.func @transform_7(%arg0: i32) -> (i32, i32) {
    %c0_i32 = arith.constant 0 : i32
    %c0_i32_0 = arith.constant 0 : i32
    return %arg0, %c0_i32 : i32, i32
  }
}

</mosaic_0001>

<bundles_post_ra>
// kernel: tpu_custom_call.1
= control target key start
LH: loop header
LB: loop body
LE: loop exit
PB: predicated region body
PF: predicated region fallthrough
CT: control target
= control target key end

     0   :  { %v363_v1 = vmov 0.0   ;;  %vm364_vm0 = vmmov 0   ;;  %vm53_vm1 = vcmask 261120   ;;  %s450_s0 = inlined_call_operand.vmem [shape: f32[8,32], index: 0, kind: input, shape index: {}]   ;;  %s451_s1 = inlined_call_operand.vmem [shape: bf16[32,64], index: 1, kind: input, shape index: {}]   ;;  %s452_s2 = inlined_call_operand.vmem [shape: f32[1,64], index: 2, kind: input, shape index: {}]   ;;  %s453_s3 = inlined_call_operand.vmem [shape: bf16[64,32], index: 3, kind: input, shape index: {}]   ;;  %s454_s4 = inlined_call_operand.vmem [shape: f32[1,32], index: 4, kind: input, shape index: {}]   ;;  %s455_s5 = inlined_call_operand.vmem [shape: bf16[32,8], index: 5, kind: input, shape index: {}]   ;;  %s456_s6 = inlined_call_operand.vmem [shape: f32[1,8], index: 6, kind: input, shape index: {}]   ;;  %s457_s7 = inlined_call_operand.hbm [shape: f32[8,8], index: 7, kind: output, shape index: {}]  }
   0x1   :  { %v329_v0 = vld [vmem:[%s451_s1 + $0x8] sm:$0xff]   ;;  %298 = vmatprep.subr.bf16.mxu0 %v363_v1  ;;  %v330_v2 = vld [vmem:[%s451_s1] sm:$0xff]   ;;  %306 = vmatprep.subr.bf16.mxu1 %v363_v1  ;;  %v331_v4 = vld [vmem:[%s453_s3 + $0x18] sm:$0xff]  }
   0x2   :  { %299 = vmatpush3.bf16.msra.mxu0 %v329_v0  ;;  %302 = vmatprep.mubr.msk.bf16.mxu0 %vm364_vm0, %v363_v1  ;;  %v28_v3 = vld [vmem:[%s450_s0] sm:$0xff]  ;;  %v332_v5 = vld [vmem:[%s453_s3 + $0x10] sm:$0xff]  }
   0x3   :  { %300 = vmatprep.subr.bf16.mxu0 %v363_v1  ;;  %314 = vmatprep.mubr.msk.bf16.mxu1 %vm364_vm0, %v363_v1  ;;  %v34_v6 = vpack.c.bf16 %v28_v3, %v28_v3 }
   0x4   :  { %307 = vmatpush3.bf16.msra.mxu1 %v331_v4 }
   0x5   :  { %308 = vmatprep.subr.bf16.mxu1 %v363_v1 }
   0x6   :  { %301 = vmatpush3.bf16.msra.mxu0 %v330_v2 }
   0x7   :  { %318 = vmatprep.subr.bf16.mxu0 %v363_v1 }
   0x8   :  { %12 = vsyncpa [#allocation3], 0  ;;  %309 = vmatpush3.bf16.msra.mxu1 %v332_v5  ;;  %v333_v7 = vld [vmem:[%s453_s3 + $0x8] sm:$0xff]   ;;  %v334_v8 = vld [vmem:[%s453_s3] sm:$0xff]   ;;  %vm138_vm2 = vcmask 523264   ;;  %vm256_vm3 = vcmask 64512  }
   0x9   :  { %303 = vmatmul.mubr.msk.bf16.vlgmr.msra.gmra.mxu0 %vm53_vm1, %v34_v6  ;;  %310 = vmatprep.subr.bf16.mxu1 %v363_v1  ;;  %v335_v9 = vld [vmem:[%s455_s5 + $0x8] sm:$0xff]   ;;  %v272_v10 = vld [vmem:[%s452_s2] ss:$0 sm:$0xff] }
   0xa   :  { %322 = vmatprep.mubr.msk.bf16.mxu0 %vm364_vm0, %v363_v1  ;;  %319 = vmatpush3.bf16.msra.mxu0 %v335_v9  ;;  %v336_v18 = vld [vmem:[%s455_s5] sm:$0xff]  }
   0xb   :  { %320 = vmatprep.subr.bf16.mxu0 %v363_v1  ;;  %v276_v19 = vld [vmem:[%s454_s4] ss:$0 sm:$0xff]  ;;  %s365_s4 = smov [#allocation2]  }
   0xc   :  { %311 = vmatpush3.bf16.msra.mxu1 %v333_v7  ;;  %v282_v27 = vld [vmem:[%s456_s6] ss:$0 sm:$0xff]  ;;  %s264_s5 = sshll.u32 %s365_s4, 4  ;;  %s265_s5 = int_to_ptr.vmem [resolvable:$true] %s264_s5 }
   0xd   :  { %312 = vmatprep.subr.bf16.mxu1 %v363_v1  ;;  %s341_s21 = scalar_lea.vmem %s265_s5, 128  ;;  %p346_p1 = scmp.lt.s32.totalorder %s265_s5, %s265_s5 }
   0xe   :  { %321 = vmatpush3.bf16.msra.mxu0 %v336_v18  ;;  %p342_p0 = scmp.ne.s32.totalorder %s265_s5, %s341_s21  ;;  %p347_p2 = scmp.lt.s32.totalorder %s341_s21, %s341_s21 }
  0x10   :  { %313 = vmatpush3.bf16.msra.mxu1 %v334_v8  ;;  %p348_p3 = por %p347_p2, %p346_p1 }
  0x12   :  { %p349_p4 = pnand %p348_p3, %p342_p0 }
  0xc9   :  { %v91_v11 = vpop.f32.mrf.mxu0 }
  0xca   :  { %v92_v12 = vadd.f32 %v272_v10, %v91_v11 }
  0xcb   :  { %v304_v13 = vpop.f32.mrf.mxu0 }
  0xcc   :  { %v97_v14 = vmax.f32 %v92_v12, 0.0 }
  0xcd   :  { %v94_v15 = vpop.f32.mrf.mxu0 }
  0xce   :  { %v107_v16 = vpack.c.bf16 %v97_v14, %v97_v14 }
  0xcf   :  { %v305_v17 = vpop.f32.mrf.mxu0 }
  0xd0   :  { %315 = vmatmul.mubr.msk.bf16.vlgmr.msra.gmra.mxu1 %vm138_vm2, %v107_v16 }
 0x190   :  { %v176_v20 = vpop.f32.mrf.mxu1 }
 0x191   :  { %v177_v21 = vadd.f32 %v276_v19, %v176_v20 }
 0x192   :  { %v316_v22 = vpop.f32.mrf.mxu1 }
 0x193   :  { %v182_v23 = vmax.f32 %v177_v21, 0.0 }
 0x194   :  { %v179_v24 = vpop.f32.mrf.mxu1 }
 0x195   :  { %v188_v25 = vpack.c.bf16 %v182_v23, %v182_v23 }
 0x196   :  { %v317_v26 = vpop.f32.mrf.mxu1 }
 0x197   :  { %323 = vmatmul.mubr.msk.bf16.vlgmr.msra.gmra.mxu0 %vm53_vm1, %v188_v25 }
 0x257   :  { %v244_v28 = vpop.f32.mrf.mxu0 }
 0x258   :  { %v245_v29 = vadd.f32 %v282_v27, %v244_v28 }
 0x259   :  { %v324_v30 = vpop.f32.mrf.mxu0 }
 0x25a   :  { %v286_v31 = vmul.f32 -1.442695, %v245_v29 }
 0x25b   :  { %v247_v32 = vpop.f32.mrf.mxu0 }
 0x25c   :  { %337 = vpow2.f32 %v286_v31 }
 0x25d   :  { %v325_v33 = vpop.f32.mrf.mxu0 }
 0x269   :  { %v338_v34 = vpop.eup %337 }
 0x26a   :  { %v253_v35 = vadd.f32 1.0, %v338_v34 }
 0x26c   :  { %339 = vrcp.f32 %v253_v35 }
 0x279   :  { %v340_v36 = vpop.eup %339 }
 0x27a   :  { %257 = vst.msk [vmem:[#allocation2] sm:$0xff] %vm256_vm3, %v340_v36 }
 0x27b   :  { %352 = shalt.err (!%p349_p4)
}
 0x27c   :  { %267 = dma.vmem_to_hbm [thread:$0]  %s265_s5, 128, %s457_s7, [#allocation3]  }
 0x27d   :  { %361 = dma.done.wait [#allocation3], 128  }
 0x27e   :  { %362 = vsyncadd [#allocation3], 4294967168 }
 0x27f   :  { %271 = vsyncpa [#allocation3], 1 }

</bundles_post_ra>
